<compile_context>
chip_gen: v6e
topology: v6e:2x2x1
jax: 0.10.0
libtpu: 0.0.40
codegen_flags: <defaults>
</compile_context>

<pallas_src>
import jax
import jax.numpy as jnp
from jax import lax
from jax.experimental import pallas as pl
from jax.experimental.pallas import tpu as pltpu


def _odefunc_kernel(p_ref, y_ref, o_ref):
    # p_ref: (27,) f32 scalar-prefetch array in SMEM:
    #   [0:10]  w1 (5,2) row-major, [10:15] b1,
    #   [15:25] w2 (2,5) row-major, [25:27] b2
    # y_ref / o_ref: (r, 128) VMEM blocks.  Lanes are feature-interleaved:
    #   even lane = feature 0, odd lane = feature 1 of the same batch row
    #   (exactly the row-major memory order of a (B, 2) array).
    lanes = y_ref.shape[-1]
    v = y_ref[...]
    v3 = v * v * v                                     # y ** 3 (both features)

    lane = lax.broadcasted_iota(jnp.int32, v3.shape, dimension=1)
    even = (lane & 1) == 0
    # De-interleave: give every lane both cubed features of its (f0, f1) pair.
    prev = pltpu.roll(v3, shift=1, axis=1)             # prev[i] = v3[i-1]
    nxt = pltpu.roll(v3, shift=lanes - 1, axis=1)      # nxt[i]  = v3[i+1]
    x0 = jnp.where(even, v3, prev)                     # cubed feature 0
    x1 = jnp.where(even, nxt, v3)                      # cubed feature 1

    # Output accumulator starts at the per-lane output bias (b2[0] on even
    # lanes, b2[1] on odd lanes) so the result is already interleaved and the
    # store is a dense, unmasked 128-lane vst.
    acc = jnp.where(even, p_ref[25], p_ref[26])
    for j in range(5):                                 # fully unrolled; VPU + EUP only
        h = jnp.tanh(x0 * p_ref[2 * j] + x1 * p_ref[2 * j + 1] + p_ref[10 + j])
        w2_sel = jnp.where(even, p_ref[15 + j], p_ref[20 + j])
        acc = acc + h * w2_sel
    o_ref[...] = acc.astype(o_ref.dtype)


def _reference(y, w1, b1, w2, b2):
    """Pure-jnp reference (full f32 precision)."""
    x = y ** 3
    h = jnp.tanh(jnp.dot(x, w1.T, precision=lax.Precision.HIGHEST) + b1)
    return jnp.dot(h, w2.T, precision=lax.Precision.HIGHEST) + b2


def _round_up(x, m):
    return ((x + m - 1) // m) * m


def ode_func_grad(y, w1, b1, w2, b2, *,
                  lanes=128, max_rows_per_block=4096, target_blocks=2,
                  min_pallas_batch=1024):
    """Forward pass of ODEFuncGrad.

    y: (B, 2) float32.  w1: (5, 2), b1: (5,), w2: (2, 5), b2: (2,)
    (PyTorch nn.Linear layouts).  Returns (B, 2) float32.
    """
    y = jnp.asarray(y, jnp.float32)
    B, F = y.shape
    assert F == 2
    assert lanes % 128 == 0 and max_rows_per_block % 8 == 0

    # Tiny batches: pallas_call launch + pipeline fill costs more than the
    # whole computation — use plain XLA.
    if B < min_pallas_batch:
        return _reference(y, w1, b1, w2, b2)

    params = jnp.concatenate([
        jnp.asarray(w1, jnp.float32).reshape(-1),   # 10
        jnp.asarray(b1, jnp.float32).reshape(-1),   # 5
        jnp.asarray(w2, jnp.float32).reshape(-1),   # 10
        jnp.asarray(b2, jnp.float32).reshape(-1),   # 2
    ])                                              # (27,)

    # Minimal pad so the row-major (B, 2) buffer reshapes (for free, same
    # linear order) to a lane-dense (R, lanes) view.  For B % (lanes//2) == 0
    # there is no copy at all.
    half = lanes // 2
    Bp = _round_up(B, half)
    if Bp != B:
        y = jnp.pad(y, ((0, Bp - B), (0, 0)))       # small tail pad only
    R = (Bp * 2) // lanes
    y2d = y.reshape(R, lanes)                       # free reshape (row-major)

    # Adaptive block size: aim for `target_blocks` balanced blocks of real
    # work (keeps both v7x TensorCores busy without dummy blocks), multiple of
    # 8 sublanes, capped at ~2 MiB per buffer.  Non-dividing last block is
    # handled (masked) by Pallas.
    rows_per_block = _round_up(max(pl.cdiv(R, target_blocks), 1), 8)
    rows_per_block = min(rows_per_block, max_rows_per_block)
    num_blocks = pl.cdiv(R, rows_per_block)

    out2d = pl.pallas_call(
        _odefunc_kernel,
        out_shape=jax.ShapeDtypeStruct((R, lanes), jnp.float32),
        grid_spec=pltpu.PrefetchScalarGridSpec(
            num_scalar_prefetch=1,                  # params -> SMEM, copied once
            grid=(num_blocks,),
            in_specs=[
                pl.BlockSpec((rows_per_block, lanes), lambda i, p: (i, 0)),
            ],
            out_specs=pl.BlockSpec((rows_per_block, lanes), lambda i, p: (i, 0)),
        ),
        compiler_params=pltpu.CompilerParams(
            dimension_semantics=("parallel",),
        ),
    )(params, y2d)

    out = out2d.reshape(Bp, 2)                      # free reshape back
    return out if Bp == B else out[:B]


if __name__ == "__main__":
    key = jax.random.PRNGKey(0)
    k_y, k_w1, k_b1, k_w2, k_b2 = jax.random.split(key, 5)

    # Deterministic "init_values" for the two Linear layers (PyTorch shapes).
    w1 = jax.random.normal(k_w1, (5, 2), dtype=jnp.float32) * 0.5
    b1 = jax.random.normal(k_b1, (5,), dtype=jnp.float32) * 0.1
    w2 = jax.random.normal(k_w2, (2, 5), dtype=jnp.float32) * 0.5
    b2 = jax.random.normal(k_b2, (2,), dtype=jnp.float32) * 0.1

    # 1) Awkward batch size: exercises the small tail pad, the free reshape,
    #    and a partial (masked) last block.
    B1 = 3000
    y1 = jax.random.normal(k_y, (B1, 2), dtype=jnp.float32)
    out1 = jax.block_until_ready(ode_func_grad(y1, w1, b1, w2, b2))
    ref1 = _reference(y1, w1, b1, w2, b2)
    assert out1.shape == (B1, 2)
    assert jnp.allclose(out1, ref1, atol=1e-5, rtol=1e-5), "mismatch (padded path)"

    # 2) Lane-aligned batch: zero-copy wrapper path (no pad, no output slice),
    #    two balanced blocks.
    B2 = 4096
    y2 = jax.random.normal(k_y, (B2, 2), dtype=jnp.float32)
    out2 = jax.block_until_ready(ode_func_grad(y2, w1, b1, w2, b2))
    ref2 = _reference(y2, w1, b1, w2, b2)
    assert out2.shape == (B2, 2)
    assert jnp.allclose(out2, ref2, atol=1e-5, rtol=1e-5), "mismatch (aligned path)"

    print("KERNEL_OK")
</pallas_src>

<mosaic_0001>
module attributes {stable_mosaic.version = 11 : i64} {
  func.func @_odefunc_kernel(%arg0: i32, %arg1: memref<27xf32, #tpu.memory_space<smem>>, %arg2: memref<24x128xf32, #tpu.memory_space<vmem>>, %arg3: memref<24x128xf32, #tpu.memory_space<vmem>>) attributes {dimension_semantics = [#tpu.dimension_semantics<parallel>], iteration_bounds = array<i64: 2>, scalar_prefetch = 1 : i64, scratch_operands = 0 : i64, tpu.core_type = #tpu.core_type<tc>, window_params = [{transform_indices = @transform_0, window_bounds = array<i64: 24, 128>}, {transform_indices = @transform_1, window_bounds = array<i64: 24, 128>}]} {
    %c0 = arith.constant 0 : index
    %c0_0 = arith.constant 0 : index
    %0 = vector.load %arg2[%c0, %c0_0] : memref<24x128xf32, #tpu.memory_space<vmem>>, vector<24x128xf32>
    %1 = arith.mulf %0, %0 : vector<24x128xf32>
    %2 = arith.mulf %1, %0 : vector<24x128xf32>
    %3 = tpu.iota {dimensions = array<i32: 1>} : vector<24x128xi32>
    %c1_i32 = arith.constant 1 : i32
    %4 = vector.broadcast %c1_i32 : i32 to vector<24x128xi32>
    %5 = arith.andi %3, %4 : vector<24x128xi32>
    %c0_i32 = arith.constant 0 : i32
    %6 = vector.broadcast %c0_i32 : i32 to vector<24x128xi32>
    %7 = arith.cmpi eq, %5, %6 : vector<24x128xi32>
    %c1_i32_1 = arith.constant 1 : i32
    %8 = tpu.dynamic_rotate %2 by %c1_i32_1 dim 1 : vector<24x128xf32>, i32 -> vector<24x128xf32>
    %c127_i32 = arith.constant 127 : i32
    %9 = tpu.dynamic_rotate %2 by %c127_i32 dim 1 : vector<24x128xf32>, i32 -> vector<24x128xf32>
    %10 = arith.select %7, %2, %8 : vector<24x128xi1>, vector<24x128xf32>
    %11 = arith.select %7, %9, %2 : vector<24x128xi1>, vector<24x128xf32>
    %c25 = arith.constant 25 : index
    %12 = memref.load %arg1[%c25] : memref<27xf32, #tpu.memory_space<smem>>
    %c26 = arith.constant 26 : index
    %13 = memref.load %arg1[%c26] : memref<27xf32, #tpu.memory_space<smem>>
    %14 = vector.broadcast %12 : f32 to vector<24x128xf32>
    %15 = vector.broadcast %13 : f32 to vector<24x128xf32>
    %16 = arith.select %7, %14, %15 : vector<24x128xi1>, vector<24x128xf32>
    %c0_2 = arith.constant 0 : index
    %17 = memref.load %arg1[%c0_2] : memref<27xf32, #tpu.memory_space<smem>>
    %18 = vector.broadcast %17 : f32 to vector<24x128xf32>
    %19 = arith.mulf %10, %18 : vector<24x128xf32>
    %c1 = arith.constant 1 : index
    %20 = memref.load %arg1[%c1] : memref<27xf32, #tpu.memory_space<smem>>
    %21 = vector.broadcast %20 : f32 to vector<24x128xf32>
    %22 = arith.mulf %11, %21 : vector<24x128xf32>
    %23 = arith.addf %19, %22 : vector<24x128xf32>
    %c10 = arith.constant 10 : index
    %24 = memref.load %arg1[%c10] : memref<27xf32, #tpu.memory_space<smem>>
    %25 = vector.broadcast %24 : f32 to vector<24x128xf32>
    %26 = arith.addf %23, %25 : vector<24x128xf32>
    %27 = math.tanh %26 : vector<24x128xf32>
    %c15 = arith.constant 15 : index
    %28 = memref.load %arg1[%c15] : memref<27xf32, #tpu.memory_space<smem>>
    %c20 = arith.constant 20 : index
    %29 = memref.load %arg1[%c20] : memref<27xf32, #tpu.memory_space<smem>>
    %30 = vector.broadcast %28 : f32 to vector<24x128xf32>
    %31 = vector.broadcast %29 : f32 to vector<24x128xf32>
    %32 = arith.select %7, %30, %31 : vector<24x128xi1>, vector<24x128xf32>
    %33 = arith.mulf %27, %32 : vector<24x128xf32>
    %34 = arith.addf %16, %33 : vector<24x128xf32>
    %c2 = arith.constant 2 : index
    %35 = memref.load %arg1[%c2] : memref<27xf32, #tpu.memory_space<smem>>
    %36 = vector.broadcast %35 : f32 to vector<24x128xf32>
    %37 = arith.mulf %10, %36 : vector<24x128xf32>
    %c3 = arith.constant 3 : index
    %38 = memref.load %arg1[%c3] : memref<27xf32, #tpu.memory_space<smem>>
    %39 = vector.broadcast %38 : f32 to vector<24x128xf32>
    %40 = arith.mulf %11, %39 : vector<24x128xf32>
    %41 = arith.addf %37, %40 : vector<24x128xf32>
    %c11 = arith.constant 11 : index
    %42 = memref.load %arg1[%c11] : memref<27xf32, #tpu.memory_space<smem>>
    %43 = vector.broadcast %42 : f32 to vector<24x128xf32>
    %44 = arith.addf %41, %43 : vector<24x128xf32>
    %45 = math.tanh %44 : vector<24x128xf32>
    %c16 = arith.constant 16 : index
    %46 = memref.load %arg1[%c16] : memref<27xf32, #tpu.memory_space<smem>>
    %c21 = arith.constant 21 : index
    %47 = memref.load %arg1[%c21] : memref<27xf32, #tpu.memory_space<smem>>
    %48 = vector.broadcast %46 : f32 to vector<24x128xf32>
    %49 = vector.broadcast %47 : f32 to vector<24x128xf32>
    %50 = arith.select %7, %48, %49 : vector<24x128xi1>, vector<24x128xf32>
    %51 = arith.mulf %45, %50 : vector<24x128xf32>
    %52 = arith.addf %34, %51 : vector<24x128xf32>
    %c4 = arith.constant 4 : index
    %53 = memref.load %arg1[%c4] : memref<27xf32, #tpu.memory_space<smem>>
    %54 = vector.broadcast %53 : f32 to vector<24x128xf32>
    %55 = arith.mulf %10, %54 : vector<24x128xf32>
    %c5 = arith.constant 5 : index
    %56 = memref.load %arg1[%c5] : memref<27xf32, #tpu.memory_space<smem>>
    %57 = vector.broadcast %56 : f32 to vector<24x128xf32>
    %58 = arith.mulf %11, %57 : vector<24x128xf32>
    %59 = arith.addf %55, %58 : vector<24x128xf32>
    %c12 = arith.constant 12 : index
    %60 = memref.load %arg1[%c12] : memref<27xf32, #tpu.memory_space<smem>>
    %61 = vector.broadcast %60 : f32 to vector<24x128xf32>
    %62 = arith.addf %59, %61 : vector<24x128xf32>
    %63 = math.tanh %62 : vector<24x128xf32>
    %c17 = arith.constant 17 : index
    %64 = memref.load %arg1[%c17] : memref<27xf32, #tpu.memory_space<smem>>
    %c22 = arith.constant 22 : index
    %65 = memref.load %arg1[%c22] : memref<27xf32, #tpu.memory_space<smem>>
    %66 = vector.broadcast %64 : f32 to vector<24x128xf32>
    %67 = vector.broadcast %65 : f32 to vector<24x128xf32>
    %68 = arith.select %7, %66, %67 : vector<24x128xi1>, vector<24x128xf32>
    %69 = arith.mulf %63, %68 : vector<24x128xf32>
    %70 = arith.addf %52, %69 : vector<24x128xf32>
    %c6 = arith.constant 6 : index
    %71 = memref.load %arg1[%c6] : memref<27xf32, #tpu.memory_space<smem>>
    %72 = vector.broadcast %71 : f32 to vector<24x128xf32>
    %73 = arith.mulf %10, %72 : vector<24x128xf32>
    %c7 = arith.constant 7 : index
    %74 = memref.load %arg1[%c7] : memref<27xf32, #tpu.memory_space<smem>>
    %75 = vector.broadcast %74 : f32 to vector<24x128xf32>
    %76 = arith.mulf %11, %75 : vector<24x128xf32>
    %77 = arith.addf %73, %76 : vector<24x128xf32>
    %c13 = arith.constant 13 : index
    %78 = memref.load %arg1[%c13] : memref<27xf32, #tpu.memory_space<smem>>
    %79 = vector.broadcast %78 : f32 to vector<24x128xf32>
    %80 = arith.addf %77, %79 : vector<24x128xf32>
    %81 = math.tanh %80 : vector<24x128xf32>
    %c18 = arith.constant 18 : index
    %82 = memref.load %arg1[%c18] : memref<27xf32, #tpu.memory_space<smem>>
    %c23 = arith.constant 23 : index
    %83 = memref.load %arg1[%c23] : memref<27xf32, #tpu.memory_space<smem>>
    %84 = vector.broadcast %82 : f32 to vector<24x128xf32>
    %85 = vector.broadcast %83 : f32 to vector<24x128xf32>
    %86 = arith.select %7, %84, %85 : vector<24x128xi1>, vector<24x128xf32>
    %87 = arith.mulf %81, %86 : vector<24x128xf32>
    %88 = arith.addf %70, %87 : vector<24x128xf32>
    %c8 = arith.constant 8 : index
    %89 = memref.load %arg1[%c8] : memref<27xf32, #tpu.memory_space<smem>>
    %90 = vector.broadcast %89 : f32 to vector<24x128xf32>
    %91 = arith.mulf %10, %90 : vector<24x128xf32>
    %c9 = arith.constant 9 : index
    %92 = memref.load %arg1[%c9] : memref<27xf32, #tpu.memory_space<smem>>
    %93 = vector.broadcast %92 : f32 to vector<24x128xf32>
    %94 = arith.mulf %11, %93 : vector<24x128xf32>
    %95 = arith.addf %91, %94 : vector<24x128xf32>
    %c14 = arith.constant 14 : index
    %96 = memref.load %arg1[%c14] : memref<27xf32, #tpu.memory_space<smem>>
    %97 = vector.broadcast %96 : f32 to vector<24x128xf32>
    %98 = arith.addf %95, %97 : vector<24x128xf32>
    %99 = math.tanh %98 : vector<24x128xf32>
    %c19 = arith.constant 19 : index
    %100 = memref.load %arg1[%c19] : memref<27xf32, #tpu.memory_space<smem>>
    %c24 = arith.constant 24 : index
    %101 = memref.load %arg1[%c24] : memref<27xf32, #tpu.memory_space<smem>>
    %102 = vector.broadcast %100 : f32 to vector<24x128xf32>
    %103 = vector.broadcast %101 : f32 to vector<24x128xf32>
    %104 = arith.select %7, %102, %103 : vector<24x128xi1>, vector<24x128xf32>
    %105 = arith.mulf %99, %104 : vector<24x128xf32>
    %106 = arith.addf %88, %105 : vector<24x128xf32>
    %c0_3 = arith.constant 0 : index
    %c0_4 = arith.constant 0 : index
    %107 = vector.load %arg3[%c0_3, %c0_4] : memref<24x128xf32, #tpu.memory_space<vmem>>, vector<24x128xf32>
    tpu.vector_store %arg3[%c0_3, %c0_4], %106 {strides = array<i32>} : memref<24x128xf32, #tpu.memory_space<vmem>>, vector<24x128xf32>,
    return
  }
  func.func @transform_0(%arg0: i32, %arg1: memref<27xf32, #tpu.memory_space<smem>>) -> (i32, i32) {
    %c0_i32 = arith.constant 0 : i32
    %c0_i32_0 = arith.constant 0 : i32
    return %arg0, %c0_i32 : i32, i32
  }
  func.func @transform_1(%arg0: i32, %arg1: memref<27xf32, #tpu.memory_space<smem>>) -> (i32, i32) {
    %c0_i32 = arith.constant 0 : i32
    %c0_i32_0 = arith.constant 0 : i32
    return %arg0, %c0_i32 : i32, i32
  }
}

</mosaic_0001>

<bundles_post_ra>
// kernel: tpu_custom_call.1
= control target key start
LH: loop header
LB: loop body
LE: loop exit
PB: predicated region body
PF: predicated region fallthrough
CT: control target
= control target key end

     0   :  { %s653_s9 = smov [#allocation3]   ;;  %s965_s0 = inlined_call_operand.hbm [shape: f32[27], index: 0, kind: input, shape index: {}]   ;;  %s966_s1 = inlined_call_operand.hbm [shape: f32[47,128], index: 1, kind: input, shape index: {}]   ;;  %s967_s2 = inlined_call_operand.hbm [shape: f32[47,128], index: 2, kind: output, shape index: {}]  }
   0x1   :  { %8 = dma.hbm_to_smem %s965_s0, 16, %s653_s9, [#allocation2] }
   0x2   :  { %627 = dma.done.wait [#allocation2], 16 }
   0x3   :  { %628 = vsyncadd [#allocation2], 4294967280 }
   0x4   :  { %10 = sfence }
   0x5   :  { %11 = vsyncpa [#allocation5], 0 }
   0x6   :  { %13 = vsyncpa [#allocation5 + $0x1], 0 }
   0x7   :  { %14 = vsyncpa [#allocation6], 0 }
   0x8   :  { %16 = vsyncpa [#allocation6 + $0x1], 0  ;;  %s680_s12 = smov 0   ;;  %s682_s13 = smov 0  }
   0x9   :  { %s684_s14 = smov 0   ;;  %s686_s15 = smov 0  }
   0xa LB: > { %s701_s0 = sadd.s32 4294967295, %s651_s15   ;;  %s428_s16 = sadd.s32 4294967294, %s651_s15   ;;  %s651_s15 = sphi %s686_s15, %s983_s15   ;;  %s647_s14 = sphi %s684_s14, %s982_s14   ;;  %s643_s13 = sphi %s682_s13, %s981_s13   ;;  %s639_s12 = sphi %s680_s12, %s980_s12  }
   0xb   : > { %s705_s17 = sadd.s32 1, %s651_s15   ;;  %s29_s18 = sadd.s32 1, %s647_s14 }
   0xc   : > { %s26_s19 = ssub.s32 %s651_s15, %s705_s17  ;;  %p36_p0 = scmp.ne.s32.totalorder %s647_s14, %s643_s13 }
   0xd   : > { %p27_p1 = scmp.eq.s32.totalorder %s26_s19, 0  ;;  %p37_p2 = scmp.eq.s32.totalorder %s651_s15, 0 }
   0xe   : > { %p42_p3 = scmp.ne.s32.totalorder %s643_s13, %s639_s12  ;;  %p43_p4 = scmp.eq.s32.totalorder %s701_s0, 0 }
   0xf   : > { %s717_s20 = scalar_select %p27_p1, %s647_s14, %s29_s18  }
  0x10   : > { %p38_p5 = por %p37_p2, %p36_p0  ;;  %p719_p6 = por %p43_p4, %p42_p3 }
  0x11   : > { %p66_p7 = scmp.eq.s32.totalorder %s701_s0, 1  ;;  %p72_p8 = scmp.eq.s32.totalorder %s428_s16, 1 }
  0x12   : > { %s970_s21 = scalar_select %p719_p6, 1, 0 }
  0x13   : > { %p478_p10 = scmp.lt.s32.totalorder %s651_s15, 2  ;;  %p726_p11 = por %p66_p7, %p36_p0 }
  0x14   : > { %p730_p12 = por %p72_p8, %p42_p3  ;;  %s92_s24 = sand.u32 1, %s647_s14  }
  0x15   : > { %s971_s22 = scalar_select %p726_p11, 1, 0 }
  0x16   : > { %s972_s23 = scalar_select %p730_p12, 1, 0 }
  0x17   : > { %s462_s25 = smul.u32 384, %s651_s15  ;;  %p741_p13 = pnand %p478_p10, %p38_p5 }
  0x18   : > { %s464_s26 = smul.u32 24, %s92_s24  ;;  %s747_s5 = scalar_lea.sflag [#allocation5], %s92_s24 }
  0x19   : > { %s739_s29 = scalar_lea.hbm %s966_s1, %s462_s25  ;;  %p559_p1 = pneg %p741_p13 }
  0x1a   : > { %s96_s3 = scalar_lea.vmem [#allocation4], %s464_s26  ;;  %s557_s6 = scalar_lea.hbm %s739_s29, 384 }
  0x1b   : > { %s103_s4 = sshll.u32 %s96_s3, 4  ;;  %p558_p0 = scmp.ne.s32.totalorder %s739_s29, %s557_s6  ;;  %s745_s4 = int_to_ptr.vmem [resolvable:$true] %s103_s4 }
  0x1c   : > { %s562_s9 = scalar_lea.hbm %s966_s1, 768  ;;  %p563_p4 = scmp.lt.s32.totalorder %s739_s29, %s966_s1 }
  0x1d   : > { %p560_p2 = pnand %p559_p1, %p558_p0  ;;  %p564_p5 = scmp.lt.s32.totalorder %s562_s9, %s557_s6 }
  0x1f   : > { %p561_p3 = pneg %p560_p2  ;;  %p565_p7 = por %p564_p5, %p563_p4 }
  0x21   : > { %p566_p8 = pnand %p565_p7, %p561_p3 }
  0x23   : > { %569 = shalt.err (!%p566_p8)
}
  0x24   : > { %s570_s16 = scalar_lea.vmem %s745_s4, 384  ;;  %s654_s18 = smov [#allocation4]  }
  0x25   : > { %p571_p10 = scmp.ne.s32.totalorder %s745_s4, %s570_s16  ;;  %s575_s19 = sshll.u32 %s654_s18, 4  ;;  %s576_s19 = int_to_ptr.vmem [resolvable:$false] %s575_s19 }
  0x26   : > { %s577_s24 = scalar_lea.vmem %s576_s19, 768  ;;  %p578_p2 = scmp.lt.s32.totalorder %s745_s4, %s576_s19 }
  0x27   : > { %p573_p9 = pnand %p571_p10, %p559_p1  ;;  %p579_p12 = scmp.lt.s32.totalorder %s577_s24, %s570_s16 }
  0x29   : > { %p574_p0 = pneg %p573_p9  ;;  %p580_p11 = por %p579_p12, %p578_p2 }
  0x2b   : > { %p581_p6 = pnand %p580_p11, %p574_p0 }
  0x2d   : > { %584 = shalt.err (!%p581_p6)
}
  0x2e   : > { %s655_s25 = smov 128   ;;  %s656_s26 = smov 8  }
  0x2f   : > { %473 = dma.hbm_to_vmem [thread:$0]  (!%p741_p13), %s739_s29, 384, %s745_s4, %s747_s5, %s655_s25, %s655_s25, %s656_s26  }
  0x30   : > { %p432_p9 = scmp.ge.s32.totalorder %s651_s15, 1  ;;  %p111_p1 = scmp.lt.s32.totalorder %s651_s15, 3 }
  0x32   : > { %p112_p3 = pnand %p432_p9, %p111_p1 }
  0x33   : > { %s771_s27 = sand.u32 (!%p112_p3), 1, %s643_s13   ;;  %p974_p6 = scmp.ne.s32.totalorder (!%p112_p3), %s970_s21, 0 }
  0x34   : > { %115 = sbr.rel (%p112_p3) target bundleno = 239 (0xef), region = 24  ;;  %s118_s3 = scalar_lea.sflag (!%p112_p3), [#allocation5], %s771_s27 }
  0x35   : > { %s465_s28 = smul.u32 (!%p112_p3), 24, %s771_s27 }
  0x37   : > { %s121_s6 = scalar_lea.vmem (!%p112_p3), [#allocation4], %s465_s28 }
  0x39   : > { %630 = dma.done.wait (%p974_p6), %s118_s3, 384  }
  0x3a   : > { %632 = vsyncadd (%p974_p6), %s118_s3, 4294966912  ;;  %v144_v0 = vld [vmem:[%s121_s6 + $0x10] sm:$0xff]  ;;  %v142_v1 = vld [vmem:[%s121_s6] sm:$0xff]  ;;  %s657_s29 = smov 1   ;;  %s658_s30 = smov 127   ;;  %v151_v9 = vlaneseq }
  0x3b   : > { %v143_v2 = vld [vmem:[%s121_s6 + $0x8] sm:$0xff]  ;;  %v147_v3 = vmul.f32 %v144_v0, %v144_v0  ;;  %v145_v4 = vmul.f32 %v142_v1, %v142_v1  ;;  %s178_s21 = sld [smem:[#allocation3]]  ;;  %p977_p12 = scmp.ne.s32.totalorder %s971_s22, 0 }
  0x3c   : > { %v146_v5 = vmul.f32 %v143_v2, %v143_v2  ;;  %s439_s4 = sld [smem:[#allocation3 + $0x2]]  ;;  %v152_v10 = vand.u32 127, %v151_v9 }
  0x3d   : > { %v781_v6 = vmul.f32 %v147_v3, %v144_v0  ;;  %v148_v7 = vmul.f32 %v145_v4, %v142_v1  ;;  %s444_s5 = sld [smem:[#allocation3 + $0x4]] }
  0x3e   : > { %v784_v8 = vmul.f32 %v146_v5, %v143_v2  ;;  %s449_s7 = sld [smem:[#allocation3 + $0x6]]  ;;  %v153_v11 = vand.u32 1, %v152_v10 }
  0x3f   : > { %159 = vrot.lane.b32.xlu1 %v781_v6, %s657_s29  ;;  %155 = vrot.lane.b32.xlu0 %v148_v7, %s657_s29  ;;  %s454_s8 = sld [smem:[#allocation3 + $0x8]] }
  0x40   : > { %s789_s9 = sld [smem:[#allocation3 + $0x19]]  ;;  %vm791_vm0 = vcmp.eq.s32.totalorder %v153_v11, 0 }
  0x41   : > { %s435_s10 = sld [smem:[#allocation3 + $0x1]]  ;;  %v179_v13 = vstv %s178_s21 }
  0x42   : > { %s436_s11 = sld [smem:[#allocation3 + $0xa]]  ;;  %v211_v14 = vstv %s439_s4 }
  0x43   : > { %161 = vrot.lane.b32.xlu1 %v148_v7, %s658_s30  ;;  %157 = vrot.lane.b32.xlu0 %v784_v8, %s657_s29  ;;  %s440_s16 = sld [smem:[#allocation3 + $0x3]]  ;;  %v243_v15 = vstv %s444_s5 }
  0x44   : > { %s441_s18 = sld [smem:[#allocation3 + $0xb]]  ;;  %v275_v16 = vstv %s449_s7 }
  0x45   : > { %s445_s19 = sld [smem:[#allocation3 + $0x5]]  ;;  %v795_v17 = vstv %s454_s8 }
  0x46   : > { %s446_s24 = sld [smem:[#allocation3 + $0xc]]  ;;  %v175_v20 = vstv %s789_s9  ;;  %s139_s9 = scalar_lea.vmem [#allocation7], %s465_s28 }
  0x47   : > { %165 = vrot.lane.b32.xlu1 %v781_v6, %s658_s30  ;;  %163 = vrot.lane.b32.xlu0 %v784_v8, %s658_s30  ;;  %s450_s25 = sld [smem:[#allocation3 + $0x7]]  ;;  %v798_v21 = vstv %s435_s10 }
  0x48   : > { %s451_s26 = sld [smem:[#allocation3 + $0xd]]  ;;  %v800_v22 = vstv %s436_s11 }
  0x49   : > { %s455_s3 = sld [smem:[#allocation3 + $0x9]]  ;;  %v802_v23 = vstv %s440_s16 }
  0x4a   : > { %s456_s6 = sld [smem:[#allocation3 + $0xe]]  ;;  %v809_v26 = vstv %s441_s18 }
  0x4b   : > { %v811_v27 = vstv %s445_s19  ;;  %s838_s29 = sld [smem:[#allocation3 + $0x1a]]  ;;  %s463_s19 = smul.u32 384, %s701_s0 }
  0x4c   : > { %v813_v28 = vstv %s446_s24  ;;  %s844_s30 = sld [smem:[#allocation3 + $0xf]]  ;;  %s355_s24 = sshll.u32 %s139_s9, 4  ;;  %s922_s24 = int_to_ptr.vmem [resolvable:$true] %s355_s24 }
  0x4d   : > { %v815_v29 = vstv %s450_s25  ;;  %s850_s21 = sld [smem:[#allocation3 + $0x14]]  ;;  %s920_s28 = scalar_lea.hbm %s967_s2, %s463_s19 }
  0x4e   : > { %v817_v30 = vstv %s451_s26  ;;  %s857_s4 = sld [smem:[#allocation3 + $0x10]]  ;;  %s585_s0 = scalar_lea.vmem %s922_s24, 384 }
  0x4f   : > { %v819_v31 = vstv %s455_s3  ;;  %s859_s5 = sld [smem:[#allocation3 + $0x15]]  ;;  %s342_s3 = scalar_lea.sflag [#allocation6], %s771_s27 }
  0x50   : > { %v821_v35 = vstv %s456_s6  ;;  %s862_s7 = sld [smem:[#allocation3 + $0x11]]  ;;  %p586_p11 = scmp.ne.s32.totalorder %s922_s24, %s585_s0 }
  0x51   : > { %s867_s8 = sld [smem:[#allocation3 + $0x16]]  ;;  %s659_s6 = smov [#allocation7]  }
  0x52   : > { %s871_s10 = sld [smem:[#allocation3 + $0x12]]  ;;  %p587_p13 = pnand %p586_p11, %p977_p12 }
  0x53   : > { %s876_s11 = sld [smem:[#allocation3 + $0x17]] }
  0x54   : > { %s881_s16 = sld [smem:[#allocation3 + $0x13]]  ;;  %p588_p4 = pneg %p587_p13 }
  0x55   : > { %s885_s18 = sld [smem:[#allocation3 + $0x18]] }
  0xb1   : > { %v160_v18 = vpop.permute.xlu1 %159  ;;  %v156_v19 = vpop.permute.xlu0 %155 }
  0xb2   : > { %v169_v24 = vsel %vm791_vm0, %v781_v6, %v160_v18  ;;  %v167_v25 = vsel %vm791_vm0, %v148_v7, %v156_v19 }
  0xb3   : > { %v182_v32 = vmul.f32 %v179_v13, %v169_v24  ;;  %v214_v33 = vmul.f32 %v211_v14, %v169_v24  ;;  %v246_v34 = vmul.f32 %v243_v15, %v169_v24  ;;  %v278_v36 = vmul.f32 %v275_v16, %v169_v24 }
  0xb4   : > { %v310_v37 = vmul.f32 %v795_v17, %v169_v24  ;;  %v180_v38 = vmul.f32 %v179_v13, %v167_v25  ;;  %v212_v39 = vmul.f32 %v211_v14, %v167_v25  ;;  %v244_v42 = vmul.f32 %v243_v15, %v167_v25 }
  0xb5   : > { %v162_v40 = vpop.permute.xlu1 %161  ;;  %v158_v41 = vpop.permute.xlu0 %157  ;;  %v276_v43 = vmul.f32 %v275_v16, %v167_v25  ;;  %v308_v50 = vmul.f32 %v795_v17, %v167_v25 }
  0xb6   : > { %v170_v44 = vsel %vm791_vm0, %v162_v40, %v148_v7  ;;  %v168_v45 = vsel %vm791_vm0, %v784_v8, %v158_v41 }
  0xb7   : > { %v185_v46 = vmul.f32 %v798_v21, %v170_v44  ;;  %v217_v47 = vmul.f32 %v802_v23, %v170_v44  ;;  %v249_v48 = vmul.f32 %v811_v27, %v170_v44  ;;  %v281_v49 = vmul.f32 %v815_v29, %v170_v44 }
  0xb8   : > { %v313_v51 = vmul.f32 %v819_v31, %v170_v44  ;;  %v181_v52 = vmul.f32 %v179_v13, %v168_v45  ;;  %v213_v53 = vmul.f32 %v211_v14, %v168_v45  ;;  %v245_v60 = vmul.f32 %v243_v15, %v168_v45 }
  0xb9   : > { %v188_v54 = vadd.f32 %v185_v46, %v180_v38  ;;  %v220_v55 = vadd.f32 %v217_v47, %v212_v39  ;;  %v252_v56 = vadd.f32 %v249_v48, %v244_v42  ;;  %v284_v57 = vadd.f32 %v281_v49, %v276_v43  ;;  %v166_v58 = vpop.permute.xlu1 %165  ;;  %v164_v63 = vpop.permute.xlu0 %163 }
  0xba   : > { %v316_v59 = vadd.f32 %v313_v51, %v308_v50  ;;  %v277_v61 = vmul.f32 %v275_v16, %v168_v45  ;;  %v172_v62 = vsel %vm791_vm0, %v166_v58, %v781_v6  ;;  %v171_v11 = vsel %vm791_vm0, %v164_v63, %v784_v8 }
  0xbb   : > { %v193_v0 = vadd.f32 %v800_v22, %v188_v54  ;;  %v225_v1 = vadd.f32 %v809_v26, %v220_v55  ;;  %v257_v2 = vadd.f32 %v813_v28, %v252_v56  ;;  %v289_v3 = vadd.f32 %v817_v30, %v284_v57 }
  0xbc   : > { %v321_v4 = vadd.f32 %v821_v35, %v316_v59  ;;  %v187_v5 = vmul.f32 %v798_v21, %v172_v62  ;;  %v219_v7 = vmul.f32 %v802_v23, %v172_v62  ;;  %v251_v6 = vmul.f32 %v811_v27, %v172_v62 }
  0xbd   : > { %519 = vtanh.f32 %v193_v0  ;;  %v283_v9 = vmul.f32 %v815_v29, %v172_v62  ;;  %v315_v10 = vmul.f32 %v819_v31, %v172_v62  ;;  %v186_v19 = vmul.f32 %v798_v21, %v171_v11 }
  0xbe   : > { %521 = vtanh.f32 %v225_v1  ;;  %v190_v13 = vadd.f32 %v187_v5, %v182_v32  ;;  %v222_v14 = vadd.f32 %v219_v7, %v214_v33  ;;  %v254_v15 = vadd.f32 %v251_v6, %v246_v34 }
  0xbf   : > { %523 = vtanh.f32 %v257_v2  ;;  %v286_v16 = vadd.f32 %v283_v9, %v278_v36  ;;  %v318_v18 = vadd.f32 %v315_v10, %v310_v37  ;;  %v189_v34 = vadd.f32 %v186_v19, %v181_v52 }
  0xc0   : > { %525 = vtanh.f32 %v289_v3  ;;  %v195_v24 = vadd.f32 %v800_v22, %v190_v13  ;;  %v227_v8 = vadd.f32 %v809_v26, %v222_v14  ;;  %v259_v25 = vadd.f32 %v813_v28, %v254_v15 }
  0xc1   : > { %527 = vtanh.f32 %v321_v4  ;;  %v291_v32 = vadd.f32 %v817_v30, %v286_v16  ;;  %v323_v33 = vadd.f32 %v821_v35, %v318_v18  ;;  %v218_v21 = vmul.f32 %v802_v23, %v171_v11 }
  0xc2   : > { %529 = vtanh.f32 %v195_v24  ;;  %v250_v36 = vmul.f32 %v811_v27, %v171_v11  ;;  %v282_v37 = vmul.f32 %v815_v29, %v171_v11  ;;  %v309_v38 = vmul.f32 %v795_v17, %v168_v45 }
  0xc3   : > { %531 = vtanh.f32 %v227_v8  ;;  %v194_v39 = vadd.f32 %v800_v22, %v189_v34  ;;  %v314_v40 = vmul.f32 %v819_v31, %v171_v11  ;;  %v221_v41 = vadd.f32 %v218_v21, %v213_v53 }
  0xc4   : > { %533 = vtanh.f32 %v259_v25  ;;  %v253_v42 = vadd.f32 %v250_v36, %v245_v60  ;;  %v285_v23 = vadd.f32 %v282_v37, %v277_v61  ;;  %v201_v27 = vstv %s844_s30 }
  0xc5   : > { %v202_v29 = vstv %s850_s21  ;;  %535 = vtanh.f32 %v291_v32  ;;  %v317_v43 = vadd.f32 %v314_v40, %v309_v38  ;;  %v176_v17 = vstv %s838_s29  ;;  %s589_s29 = sshll.u32 %s659_s6, 4  ;;  %s590_s29 = int_to_ptr.vmem [resolvable:$false] %s589_s29 }
  0xc6   : > { %537 = vtanh.f32 %v323_v33  ;;  %v226_v22 = vadd.f32 %v809_v26, %v221_v41  ;;  %v258_v31 = vadd.f32 %v813_v28, %v253_v42  ;;  %v233_v44 = vstv %s857_s4  ;;  %s591_s30 = scalar_lea.vmem %s590_s29, 768  ;;  %p592_p5 = scmp.lt.s32.totalorder %s922_s24, %s590_s29 }
  0xc7   : > { %v234_v45 = vstv %s859_s5  ;;  %539 = vtanh.f32 %v194_v39  ;;  %v290_v46 = vadd.f32 %v817_v30, %v285_v23  ;;  %v203_v47 = vsel %vm791_vm0, %v201_v27, %v202_v29  ;;  %p593_p7 = scmp.lt.s32.totalorder %s591_s30, %s585_s0 }
  0xc8   : > { %541 = vtanh.f32 %v226_v22  ;;  %v265_v48 = vstv %s862_s7  ;;  %v266_v49 = vstv %s867_s8  ;;  %v322_v50 = vadd.f32 %v821_v35, %v317_v43 }
  0xc9   : > { %543 = vtanh.f32 %v258_v31  ;;  %v177_v28 = vsel %vm791_vm0, %v175_v20, %v176_v17  ;;  %v235_v51 = vsel %vm791_vm0, %v233_v44, %v234_v45  ;;  %v297_v52 = vstv %s871_s10  ;;  %p594_p8 = por %p593_p7, %p592_p5 }
  0xca   : > { %v520_v26 = vpop.eup %519  ;;  %v298_v53 = vstv %s876_s11  ;;  %545 = vtanh.f32 %v290_v46  ;;  %v267_v56 = vsel %vm791_vm0, %v265_v48, %v266_v49  ;;  %v329_v57 = vstv %s881_s16 }
  0xcb   : > { %v522_v30 = vpop.eup %521  ;;  %v204_v54 = vmul.f32 %v520_v26, %v203_v47  ;;  %547 = vtanh.f32 %v322_v50  ;;  %v330_v60 = vstv %s885_s18  ;;  %v299_v20 = vsel %vm791_vm0, %v297_v52, %v298_v53  ;;  %p595_p10 = pnand %p594_p8, %p588_p4 }
  0xcc   : > { %v524_v55 = vpop.eup %523  ;;  %v236_v59 = vmul.f32 %v522_v30, %v235_v51  ;;  %v331_v3 = vsel %vm791_vm0, %v329_v57, %v330_v60 }
  0xcd   : > { %v526_v35 = vpop.eup %525  ;;  %v207_v58 = vadd.f32 %v204_v54, %v177_v28  ;;  %v268_v0 = vmul.f32 %v524_v55, %v267_v56 }
  0xce   : > { %v528_v61 = vpop.eup %527  ;;  %v300_v5 = vmul.f32 %v526_v35, %v299_v20 }
  0xcf   : > { %v530_v62 = vpop.eup %529  ;;  %v239_v63 = vadd.f32 %v236_v59, %v207_v58  ;;  %v332_v14 = vmul.f32 %v528_v61, %v331_v3 }
  0xd0   : > { %v532_v1 = vpop.eup %531  ;;  %v206_v2 = vmul.f32 %v530_v62, %v203_v47 }
  0xd1   : > { %v534_v4 = vpop.eup %533  ;;  %v271_v7 = vadd.f32 %v268_v0, %v239_v63  ;;  %v238_v10 = vmul.f32 %v532_v1, %v235_v51 }
  0xd2   : > { %v536_v6 = vpop.eup %535  ;;  %v209_v9 = vadd.f32 %v206_v2, %v177_v28  ;;  %v270_v18 = vmul.f32 %v534_v4, %v267_v56 }
  0xd3   : > { %v538_v11 = vpop.eup %537  ;;  %v303_v13 = vadd.f32 %v300_v5, %v271_v7  ;;  %v302_v12 = vmul.f32 %v536_v6, %v299_v20 }
  0xd4   : > { %v540_v15 = vpop.eup %539  ;;  %v241_v16 = vadd.f32 %v238_v10, %v209_v9  ;;  %v334_v37 = vmul.f32 %v538_v11, %v331_v3 }
  0xd5   : > { %v542_v19 = vpop.eup %541  ;;  %v205_v24 = vmul.f32 %v540_v15, %v203_v47  ;;  %v335_v8 = vadd.f32 %v332_v14, %v303_v13 }
  0xd6   : > { %v544_v25 = vpop.eup %543  ;;  %v273_v32 = vadd.f32 %v270_v18, %v241_v16  ;;  %v237_v34 = vmul.f32 %v542_v19, %v235_v51 }
  0xd7   : > { %v208_v33 = vadd.f32 %v205_v24, %v177_v28  ;;  %338 = vst [vmem:[%s139_s9] sm:$0xff] %v335_v8  ;;  %v546_v21 = vpop.eup %545  ;;  %v269_v39 = vmul.f32 %v544_v25, %v267_v56 }
  0xd8   : > { %v305_v36 = vadd.f32 %v302_v12, %v273_v32  ;;  %v548_v40 = vpop.eup %547  ;;  %v301_v42 = vmul.f32 %v546_v21, %v299_v20 }
  0xd9   : > { %v240_v38 = vadd.f32 %v237_v34, %v208_v33  ;;  %v333_v29 = vmul.f32 %v548_v40, %v331_v3 }
  0xda   : > { %v337_v41 = vadd.f32 %v334_v37, %v305_v36 }
  0xdb   : > { %v272_v23 = vadd.f32 %v269_v39, %v240_v38 }
  0xdc   : > { %340 = vst [vmem:[%s139_s9 + $0x10] sm:$0xff] %v337_v41 }
  0xdd   : > { %v304_v27 = vadd.f32 %v301_v42, %v272_v23 }
  0xdf   : > { %v336_v43 = vadd.f32 %v333_v29, %v304_v27 }
  0xe1   : > { %339 = vst [vmem:[%s139_s9 + $0x8] sm:$0xff] %v336_v43 }
  0xe2   : > { %598 = shalt.err (!%p595_p10)
}
  0xe3   : > { %s599_s21 = scalar_lea.hbm %s920_s28, 384  ;;  %s603_s7 = scalar_lea.hbm %s967_s2, 768 }
  0xe4   : > { %p600_p0 = scmp.ne.s32.totalorder %s920_s28, %s599_s21  ;;  %p604_p1 = scmp.lt.s32.totalorder %s920_s28, %s967_s2 }
  0xe5   : > { %p605_p3 = scmp.lt.s32.totalorder %s603_s7, %s599_s21 }
  0xe6   : > { %p601_p2 = pnand %p600_p0, %p977_p12 }
  0xe7   : > { %p606_p6 = por %p605_p3, %p604_p1 }
  0xe8   : > { %p602_p9 = pneg %p601_p2 }
  0xea   : > { %p607_p11 = pnand %p606_p6, %p602_p9 }
  0xec   : > { %610 = shalt.err (!%p607_p11)
}
  0xed   : > { %s660_s11 = smov 128   ;;  %s661_s16 = smov 8  }
  0xee   : > { %468 = dma.vmem_to_hbm [thread:$0]  (%p977_p12), %s922_s24, 384, %s920_s28, %s342_s3, %s660_s11, %s660_s11, %s661_s16  }
  0xef PF: > { %s370_s18 = sand.u32 1, %s639_s12   ;;  %p978_p13 = scmp.ne.s32.totalorder %s972_s23, 0 }
  0xf0   : > { %p979_p4 = scmp.ge.s32.totalorder %s651_s15, 2  ;;  %s371_s9 = scalar_lea.sflag [#allocation6], %s370_s18 }
  0xf2   : > { %p475_p5 = pnand %p979_p4, %p978_p13 }
  0xf4   : > { %p476_p7 = pneg %p475_p5 }
  0xf6   : > { %634 = dma.done.wait (%p476_p7), %s371_s9, 384  }
  0xf7   : > { %636 = vsyncadd (%p476_p7), %s371_s9, 4294966912  ;;  %p19_p8 = scmp.ge.s32.totalorder %s705_s17, 4   ;;  %s980_s12 = smov %s643_s13 }
  0xf8   : > { %s981_s13 = smov %s647_s14  ;;  %s982_s14 = smov %s717_s20 }
  0xf9   : > { %s983_s15 = smov %s705_s17  ;;  %21 = sbr.rel (!%p19_p8) target bundleno = 10 (0xa), region = 69 }
  0xfe   :  { %376 = vsyncpa [#allocation5], 1 }
  0xff   :  { %378 = vsyncpa [#allocation5 + $0x1], 1 }
 0x100   :  { %379 = vsyncpa [#allocation6], 1 }
 0x101   :  { %381 = vsyncpa [#allocation6 + $0x1], 1 }

</bundles_post_ra>
